<compile_context>
chip_gen: v6e
topology: v6e:2x2x1
jax: 0.10.0
libtpu: 0.0.40
codegen_flags: <defaults>
</compile_context>

<pallas_src>
import jax
import jax.numpy as jnp
from jax import lax
from jax.experimental import pallas as pl
from jax.experimental.pallas import tpu as pltpu
import numpy as np


def ciu_kernel(x_ref,          # [B, S, E]   f32
               sw1_ref,        # [E, H]      bf16  set_encoder Linear 1
               sw2_ref,        # [H, E]      bf16  set_encoder Linear 2
               gru_w_ref,      # [2, E, 3E]  bf16  (0: W_ih r|z|n, 1: W_hh r|z|n)
               cw_ref,         # [2E, E]     bf16  combine (rows 0:E set, E:2E seq)
               bias_ref,       # [8, >=128]  f32   packed bias slab
               out_ref,        # [B, E]      f32
               gi_ref):        # VMEM scratch [S, B, 3E] f32
    B, S, E = x_ref.shape
    H = sw1_ref.shape[1]
    f32 = jnp.float32
    bf16 = jnp.bfloat16

    x = x_ref[...]                                   # [B, S, E] f32

    # ---- biases, sliced once from the packed slab (all f32) -----------------
    sb1 = bias_ref[0:1, 0:H]                         # [1, H]
    sb2 = bias_ref[1:2, 0:E]                         # [1, E]
    gi_b = bias_ref[2:3, 0:3 * E]                    # [1, 3E]  (bih_r+bhh_r | bih_z+bhh_z | bih_n)
    b_hn = jnp.broadcast_to(bias_ref[3:4, 0:E], (B, E))   # hoisted broadcast of b_hh_n
    cb = bias_ref[4:5, 0:E]                          # [1, E]

    # ---- set encoder: Linear(E->H) -> ReLU -> Linear(H->E) on mean over seq -
    mean_x = jnp.mean(x, axis=1)                     # [B, E]
    h1 = jnp.dot(mean_x.astype(bf16), sw1_ref[...],
                 preferred_element_type=f32) + sb1
    h1 = jnp.maximum(h1, 0.0)                        # ReLU (f32)
    set_repr = jnp.dot(h1.astype(bf16), sw2_ref[...],
                       preferred_element_type=f32) + sb2

    # ---- GRU: hoisted fused input projection (off the recurrence path) ------
    # x -> [S, B, E] so gi lands in [S, B, 3E]; per-step access is then a
    # cheap leading-axis load from VMEM scratch.
    w_ih = gru_w_ref[0]                              # [E, 3E] bf16
    w_hh = gru_w_ref[1]                              # [E, 3E] bf16
    x_t = jnp.swapaxes(x, 0, 1).reshape(S * B, E)    # row = t*B + b
    gi = jnp.dot(x_t.astype(bf16), w_ih, preferred_element_type=f32) + gi_b
    gi_ref[...] = gi.reshape(S, B, 3 * E)

    # ---- GRU recurrence: ONE fused h @ W_hh MXU push per step ---------------
    def gru_step(t, h):
        gi_t = gi_ref[t]                             # [B, 3E]  leading-axis vld
        gh = jnp.dot(h.astype(bf16), w_hh,
                     preferred_element_type=f32)     # [B, 3E]  single MXU push
        rz = jax.nn.sigmoid(gi_t[:, 0:2 * E] + gh[:, 0:2 * E])   # fused r|z EUP
        r = rz[:, 0:E]
        z = rz[:, E:2 * E]
        n = jnp.tanh(gi_t[:, 2 * E:3 * E] + r * (gh[:, 2 * E:3 * E] + b_hn))
        return (1.0 - z) * n + z * h

    h0 = jnp.zeros((B, E), f32)
    seq_repr = lax.fori_loop(0, S, gru_step, h0, unroll=True)    # [B, E]

    # ---- combine: tanh(Linear(concat([set, seq], -1))) ----------------------
    comb = jnp.tanh(
        jnp.dot(set_repr.astype(bf16), cw_ref[0:E, :], preferred_element_type=f32)
        + jnp.dot(seq_repr.astype(bf16), cw_ref[E:2 * E, :], preferred_element_type=f32)
        + cb)
    # TODO(synk): at production sizes, pack batch groups along lanes (or pad to
    # a 128-multiple last dim) so this becomes an unmasked lane-dense store.
    out_ref[...] = comb.astype(out_ref.dtype)


def consecutive_intent_unit(x, params):
    """x: [B, S, E] f32 -> [B, E] f32."""
    B, S, E = x.shape
    H = params["sw1"].shape[1]
    bf16 = jnp.bfloat16

    # --- pack 18 raw parameters into 5 kernel arrays (plus x) ----------------
    # GRU weights stacked [2, E, 3E]: index 0 = W_ih (r|z|n), index 1 = W_hh.
    w_ih = jnp.concatenate([params["wih_r"], params["wih_z"], params["wih_n"]], axis=1)
    w_hh = jnp.concatenate([params["whh_r"], params["whh_z"], params["whh_n"]], axis=1)
    gru_w = jnp.stack([w_ih, w_hh], axis=0).astype(bf16)          # [2, E, 3E]

    # Combine weight [2E, E]: rows 0:E multiply set_repr, rows E:2E multiply seq_repr.
    cw = jnp.concatenate([params["cw_set"], params["cw_seq"]], axis=0).astype(bf16)

    sw1 = params["sw1"].astype(bf16)
    sw2 = params["sw2"].astype(bf16)

    # Bias slab [8, slab_w] f32 (one vreg tile at E=32, H=64).
    #   row 0: set_encoder b1 (H)     row 1: set_encoder b2 (E)
    #   row 2: fused gi bias (3E)     row 3: b_hh_n (E)        row 4: combine b (E)
    # b_hh_r / b_hh_z are folded into the hoisted projection bias (valid: they
    # sit outside any multiply); b_hh_n must stay separate (under r*).
    b_r = params["bih_r"] + params["bhh_r"]
    b_z = params["bih_z"] + params["bhh_z"]
    gi_b = jnp.concatenate([b_r, b_z, params["bih_n"]], axis=1)   # [1, 3E]
    slab_w = int(np.ceil(max(H, 3 * E, 128) / 128.0) * 128)
    slab = jnp.zeros((8, slab_w), jnp.float32)
    slab = slab.at[0, :H].set(params["sb1"][0])
    slab = slab.at[1, :E].set(params["sb2"][0])
    slab = slab.at[2, :3 * E].set(gi_b[0])
    slab = slab.at[3, :E].set(params["bhh_n"][0])
    slab = slab.at[4, :E].set(params["cb"][0])

    args = (x, sw1, sw2, gru_w, cw, slab)

    flops = (2 * B * E * H + 2 * B * H * E          # set encoder MLP
             + 2 * B * S * E * 3 * E                # GRU fused input projection
             + 2 * B * S * E * 3 * E                # GRU recurrence (fused, per step)
             + 2 * B * 2 * E * E)                   # combine (set + seq halves)
    transcendentals = 3 * B * S * E + B * E
    bytes_accessed = (4 * x.size
                      + 2 * (sw1.size + sw2.size + gru_w.size + cw.size)
                      + 4 * slab.size + 4 * B * E)

    vmem = pl.BlockSpec(memory_space=pltpu.MemorySpace.VMEM)
    # NOTE: at production batch sizes, add a batch grid (BlockSpec over B,
    # dimension_semantics=("parallel",), constant index_map for the weight
    # specs) to use v7x's second TensorCore and bound VMEM residency
    # (v7x: 64 MiB physical / 32 MiB scoped, v6e: 128 MiB, v5e: 16 MiB scoped);
    # at B=2 a single gridless call is optimal.
    return pl.pallas_call(
        ciu_kernel,
        out_shape=jax.ShapeDtypeStruct((B, E), jnp.float32),
        in_specs=[vmem] * len(args),
        out_specs=vmem,
        scratch_shapes=[pltpu.VMEM((S, B, 3 * E), jnp.float32)],
        cost_estimate=pl.CostEstimate(flops=flops,
                                      transcendentals=transcendentals,
                                      bytes_accessed=int(bytes_accessed)),
    )(*args)


def init_params(key, E, H):
    """Deterministic init mimicking PyTorch defaults (uniform +/- 1/sqrt(fan))."""
    ks = jax.random.split(key, 20)

    def u(k, shape, fan_in):
        bound = 1.0 / np.sqrt(fan_in)
        return jax.random.uniform(k, shape, jnp.float32, -bound, bound)

    return {
        # set_encoder: Linear(E,H), Linear(H,E); weights stored as [in, out]
        "sw1": u(ks[0], (E, H), E), "sb1": u(ks[1], (1, H), E),
        "sw2": u(ks[2], (H, E), H), "sb2": u(ks[3], (1, E), H),
        # GRU (hidden == E): per-gate weights stored [in, out], bound 1/sqrt(E)
        "wih_r": u(ks[4], (E, E), E), "wih_z": u(ks[5], (E, E), E), "wih_n": u(ks[6], (E, E), E),
        "whh_r": u(ks[7], (E, E), E), "whh_z": u(ks[8], (E, E), E), "whh_n": u(ks[9], (E, E), E),
        "bih_r": u(ks[10], (1, E), E), "bih_z": u(ks[11], (1, E), E), "bih_n": u(ks[12], (1, E), E),
        "bhh_r": u(ks[13], (1, E), E), "bhh_z": u(ks[14], (1, E), E), "bhh_n": u(ks[15], (1, E), E),
        # combine: Linear(2E, E) split into set / seq halves, stored [in, out]
        "cw_set": u(ks[16], (E, E), 2 * E), "cw_seq": u(ks[17], (E, E), 2 * E),
        "cb": u(ks[18], (1, E), 2 * E),
    }


def reference_forward(x, p):
    """Plain-JAX f32 reference with PyTorch GRU semantics (for sanity check)."""
    E = x.shape[-1]
    mean_x = x.mean(axis=1)
    set_repr = jnp.maximum(mean_x @ p["sw1"] + p["sb1"], 0.0) @ p["sw2"] + p["sb2"]

    def step(h, x_t):
        r = jax.nn.sigmoid(x_t @ p["wih_r"] + p["bih_r"] + h @ p["whh_r"] + p["bhh_r"])
        z = jax.nn.sigmoid(x_t @ p["wih_z"] + p["bih_z"] + h @ p["whh_z"] + p["bhh_z"])
        n = jnp.tanh(x_t @ p["wih_n"] + p["bih_n"] + r * (h @ p["whh_n"] + p["bhh_n"]))
        return (1.0 - z) * n + z * h, None

    h0 = jnp.zeros((x.shape[0], E), jnp.float32)
    seq_repr, _ = lax.scan(step, h0, jnp.swapaxes(x, 0, 1))
    return jnp.tanh(set_repr @ p["cw_set"] + seq_repr @ p["cw_seq"] + p["cb"])


if __name__ == "__main__":
    B, S, E, H = 2, 8, 32, 64   # batch, seq_len, embedding_dim, hidden_dim
    key = jax.random.PRNGKey(0)
    kx, kp = jax.random.split(key)
    x = jax.random.normal(kx, (B, S, E), jnp.float32)
    params = init_params(kp, E, H)

    out = jax.block_until_ready(consecutive_intent_unit(x, params))
    ref = jax.block_until_ready(reference_forward(x, params))
    # bf16 matmul operands (f32 accumulate) => loosen tolerance vs pure-f32 ref.
    np.testing.assert_allclose(np.asarray(out), np.asarray(ref),
                               rtol=2e-2, atol=2e-2)
    print("KERNEL_OK")
</pallas_src>

<mosaic_0001>
module attributes {stable_mosaic.version = 11 : i64} {
  func.func @ciu_kernel(%arg0: memref<2x8x32xf32, #tpu.memory_space<vmem>>, %arg1: memref<32x64xbf16, #tpu.memory_space<vmem>>, %arg2: memref<64x32xbf16, #tpu.memory_space<vmem>>, %arg3: memref<2x32x96xbf16, #tpu.memory_space<vmem>>, %arg4: memref<64x32xbf16, #tpu.memory_space<vmem>>, %arg5: memref<8x128xf32, #tpu.memory_space<vmem>>, %arg6: memref<2x32xf32, #tpu.memory_space<vmem>>, %arg7: memref<8x2x96xf32, #tpu.memory_space<vmem>>) attributes {dimension_semantics = [], scalar_prefetch = 0 : i64, scratch_operands = 1 : i64, tpu.core_type = #tpu.core_type<tc>} {
    %c0 = arith.constant 0 : index
    %c0_0 = arith.constant 0 : index
    %c0_1 = arith.constant 0 : index
    %0 = vector.load %arg0[%c0, %c0_0, %c0_1] : memref<2x8x32xf32, #tpu.memory_space<vmem>>, vector<2x8x32xf32>
    %c0_2 = arith.constant 0 : index
    %c0_3 = arith.constant 0 : index
    %1 = vector.load %arg5[%c0_2, %c0_3] : memref<8x128xf32, #tpu.memory_space<vmem>>, vector<1x64xf32>
    %c1 = arith.constant 1 : index
    %c0_4 = arith.constant 0 : index
    %2 = vector.load %arg5[%c1, %c0_4] : memref<8x128xf32, #tpu.memory_space<vmem>>, vector<1x32xf32>
    %c2 = arith.constant 2 : index
    %c0_5 = arith.constant 0 : index
    %3 = vector.load %arg5[%c2, %c0_5] : memref<8x128xf32, #tpu.memory_space<vmem>>, vector<1x96xf32>
    %c3 = arith.constant 3 : index
    %c0_6 = arith.constant 0 : index
    %4 = vector.load %arg5[%c3, %c0_6] : memref<8x128xf32, #tpu.memory_space<vmem>>, vector<1x32xf32>
    %5 = vector.shape_cast %4 : vector<1x32xf32> to vector<1x32xf32>
    %6 = vector.broadcast %5 : vector<1x32xf32> to vector<2x32xf32>
    %c4 = arith.constant 4 : index
    %c0_7 = arith.constant 0 : index
    %7 = vector.load %arg5[%c4, %c0_7] : memref<8x128xf32, #tpu.memory_space<vmem>>, vector<1x32xf32>
    %cst = arith.constant dense<0.000000e+00> : vector<2x32xf32>
    %8 = vector.multi_reduction <add>, %0, %cst [1] : vector<2x8x32xf32> to vector<2x32xf32>
    %cst_8 = arith.constant 8.000000e+00 : f32
    %9 = vector.broadcast %cst_8 : f32 to vector<2x32xf32>
    %10 = arith.divf %8, %9 : vector<2x32xf32>
    %11 = arith.truncf %10 : vector<2x32xf32> to vector<2x32xbf16>
    %c0_9 = arith.constant 0 : index
    %c0_10 = arith.constant 0 : index
    %12 = vector.load %arg1[%c0_9, %c0_10] : memref<32x64xbf16, #tpu.memory_space<vmem>>, vector<32x64xbf16>
    %cst_11 = arith.constant dense<0.000000e+00> : vector<2x64xf32>
    %13 = tpu.matmul %11, %12, %cst_11 {dimension_numbers = #tpu.dot_dimension_numbers<[1], [0], [0], [1], [0, 0, 1, 1], [], []>} : vector<2x32xbf16>, vector<32x64xbf16>, vector<2x64xf32> -> vector<2x64xf32>
    %14 = vector.broadcast %1 : vector<1x64xf32> to vector<2x64xf32>
    %15 = arith.addf %13, %14 : vector<2x64xf32>
    %cst_12 = arith.constant 0.000000e+00 : f32
    %16 = vector.broadcast %cst_12 : f32 to vector<2x64xf32>
    %17 = arith.maximumf %15, %16 : vector<2x64xf32>
    %18 = arith.truncf %17 : vector<2x64xf32> to vector<2x64xbf16>
    %c0_13 = arith.constant 0 : index
    %c0_14 = arith.constant 0 : index
    %19 = vector.load %arg2[%c0_13, %c0_14] : memref<64x32xbf16, #tpu.memory_space<vmem>>, vector<64x32xbf16>
    %cst_15 = arith.constant dense<0.000000e+00> : vector<2x32xf32>
    %20 = tpu.matmul %18, %19, %cst_15 {dimension_numbers = #tpu.dot_dimension_numbers<[1], [0], [0], [1], [0, 0, 1, 1], [], []>} : vector<2x64xbf16>, vector<64x32xbf16>, vector<2x32xf32> -> vector<2x32xf32>
    %21 = vector.broadcast %2 : vector<1x32xf32> to vector<2x32xf32>
    %22 = arith.addf %20, %21 : vector<2x32xf32>
    %c0_16 = arith.constant 0 : index
    %c0_17 = arith.constant 0 : index
    %c0_18 = arith.constant 0 : index
    %23 = vector.load %arg3[%c0_16, %c0_17, %c0_18] : memref<2x32x96xbf16, #tpu.memory_space<vmem>>, vector<1x32x96xbf16>
    %24 = vector.shape_cast %23 : vector<1x32x96xbf16> to vector<32x96xbf16>
    %c1_19 = arith.constant 1 : index
    %c0_20 = arith.constant 0 : index
    %c0_21 = arith.constant 0 : index
    %25 = vector.load %arg3[%c1_19, %c0_20, %c0_21] : memref<2x32x96xbf16, #tpu.memory_space<vmem>>, vector<1x32x96xbf16>
    %26 = vector.shape_cast %25 : vector<1x32x96xbf16> to vector<32x96xbf16>
    %27 = tpu.transpose %0, [1, 0, 2] : vector<2x8x32xf32> -> vector<8x2x32xf32>
    %28 = vector.shape_cast %27 : vector<8x2x32xf32> to vector<16x32xf32>
    %29 = arith.truncf %28 : vector<16x32xf32> to vector<16x32xbf16>
    %cst_22 = arith.constant dense<0.000000e+00> : vector<16x96xf32>
    %30 = tpu.matmul %29, %24, %cst_22 {dimension_numbers = #tpu.dot_dimension_numbers<[1], [0], [0], [1], [0, 0, 1, 1], [], []>} : vector<16x32xbf16>, vector<32x96xbf16>, vector<16x96xf32> -> vector<16x96xf32>
    %31 = vector.broadcast %3 : vector<1x96xf32> to vector<16x96xf32>
    %32 = arith.addf %30, %31 : vector<16x96xf32>
    %33 = vector.shape_cast %32 : vector<16x96xf32> to vector<8x2x96xf32>
    %c0_23 = arith.constant 0 : index
    %c0_24 = arith.constant 0 : index
    %c0_25 = arith.constant 0 : index
    %34 = vector.load %arg7[%c0_23, %c0_24, %c0_25] : memref<8x2x96xf32, #tpu.memory_space<vmem>>, vector<8x2x96xf32>
    tpu.vector_store %arg7[%c0_23, %c0_24, %c0_25], %33 {strides = array<i32>} : memref<8x2x96xf32, #tpu.memory_space<vmem>>, vector<8x2x96xf32>,
    %cst_26 = arith.constant 0.000000e+00 : f32
    %35 = vector.broadcast %cst_26 : f32 to vector<2x32xf32>
    %c0_i32 = arith.constant 0 : i32
    %36 = arith.index_cast %c0_i32 : i32 to index
    %c0_27 = arith.constant 0 : index
    %c0_28 = arith.constant 0 : index
    %37 = vector.load %arg7[%36, %c0_27, %c0_28] : memref<8x2x96xf32, #tpu.memory_space<vmem>>, vector<1x2x96xf32>
    %38 = vector.shape_cast %37 : vector<1x2x96xf32> to vector<2x96xf32>
    %39 = arith.truncf %35 : vector<2x32xf32> to vector<2x32xbf16>
    %cst_29 = arith.constant dense<0.000000e+00> : vector<2x96xf32>
    %40 = tpu.matmul %39, %26, %cst_29 {dimension_numbers = #tpu.dot_dimension_numbers<[1], [0], [0], [1], [0, 0, 1, 1], [], []>} : vector<2x32xbf16>, vector<32x96xbf16>, vector<2x96xf32> -> vector<2x96xf32>
    %41 = vector.extract_strided_slice %38 {offsets = [0, 0], sizes = [2, 64], strides = [1, 1]} : vector<2x96xf32> to vector<2x64xf32>
    %42 = vector.extract_strided_slice %40 {offsets = [0, 0], sizes = [2, 64], strides = [1, 1]} : vector<2x96xf32> to vector<2x64xf32>
    %43 = arith.addf %41, %42 : vector<2x64xf32>
    %44 = arith.negf %43 : vector<2x64xf32>
    %45 = math.exp %44 : vector<2x64xf32>
    %cst_30 = arith.constant 1.000000e+00 : f32
    %46 = vector.broadcast %cst_30 : f32 to vector<2x64xf32>
    %47 = arith.addf %46, %45 : vector<2x64xf32>
    %48 = arith.divf %46, %47 : vector<2x64xf32>
    %49 = vector.extract_strided_slice %48 {offsets = [0, 0], sizes = [2, 32], strides = [1, 1]} : vector<2x64xf32> to vector<2x32xf32>
    %50 = vector.extract_strided_slice %48 {offsets = [0, 32], sizes = [2, 32], strides = [1, 1]} : vector<2x64xf32> to vector<2x32xf32>
    %51 = vector.extract_strided_slice %38 {offsets = [0, 64], sizes = [2, 32], strides = [1, 1]} : vector<2x96xf32> to vector<2x32xf32>
    %52 = vector.extract_strided_slice %40 {offsets = [0, 64], sizes = [2, 32], strides = [1, 1]} : vector<2x96xf32> to vector<2x32xf32>
    %53 = arith.addf %52, %6 : vector<2x32xf32>
    %54 = arith.mulf %49, %53 : vector<2x32xf32>
    %55 = arith.addf %51, %54 : vector<2x32xf32>
    %56 = math.tanh %55 : vector<2x32xf32>
    %cst_31 = arith.constant 1.000000e+00 : f32
    %57 = vector.broadcast %cst_31 : f32 to vector<2x32xf32>
    %58 = arith.subf %57, %50 : vector<2x32xf32>
    %59 = arith.mulf %58, %56 : vector<2x32xf32>
    %60 = arith.mulf %50, %35 : vector<2x32xf32>
    %61 = arith.addf %59, %60 : vector<2x32xf32>
    %c1_i32 = arith.constant 1 : i32
    %62 = arith.index_cast %c1_i32 : i32 to index
    %c0_32 = arith.constant 0 : index
    %c0_33 = arith.constant 0 : index
    %63 = vector.load %arg7[%62, %c0_32, %c0_33] : memref<8x2x96xf32, #tpu.memory_space<vmem>>, vector<1x2x96xf32>
    %64 = vector.shape_cast %63 : vector<1x2x96xf32> to vector<2x96xf32>
    %65 = arith.truncf %61 : vector<2x32xf32> to vector<2x32xbf16>
    %cst_34 = arith.constant dense<0.000000e+00> : vector<2x96xf32>
    %66 = tpu.matmul %65, %26, %cst_34 {dimension_numbers = #tpu.dot_dimension_numbers<[1], [0], [0], [1], [0, 0, 1, 1], [], []>} : vector<2x32xbf16>, vector<32x96xbf16>, vector<2x96xf32> -> vector<2x96xf32>
    %67 = vector.extract_strided_slice %64 {offsets = [0, 0], sizes = [2, 64], strides = [1, 1]} : vector<2x96xf32> to vector<2x64xf32>
    %68 = vector.extract_strided_slice %66 {offsets = [0, 0], sizes = [2, 64], strides = [1, 1]} : vector<2x96xf32> to vector<2x64xf32>
    %69 = arith.addf %67, %68 : vector<2x64xf32>
    %70 = arith.negf %69 : vector<2x64xf32>
    %71 = math.exp %70 : vector<2x64xf32>
    %cst_35 = arith.constant 1.000000e+00 : f32
    %72 = vector.broadcast %cst_35 : f32 to vector<2x64xf32>
    %73 = arith.addf %72, %71 : vector<2x64xf32>
    %74 = arith.divf %72, %73 : vector<2x64xf32>
    %75 = vector.extract_strided_slice %74 {offsets = [0, 0], sizes = [2, 32], strides = [1, 1]} : vector<2x64xf32> to vector<2x32xf32>
    %76 = vector.extract_strided_slice %74 {offsets = [0, 32], sizes = [2, 32], strides = [1, 1]} : vector<2x64xf32> to vector<2x32xf32>
    %77 = vector.extract_strided_slice %64 {offsets = [0, 64], sizes = [2, 32], strides = [1, 1]} : vector<2x96xf32> to vector<2x32xf32>
    %78 = vector.extract_strided_slice %66 {offsets = [0, 64], sizes = [2, 32], strides = [1, 1]} : vector<2x96xf32> to vector<2x32xf32>
    %79 = arith.addf %78, %6 : vector<2x32xf32>
    %80 = arith.mulf %75, %79 : vector<2x32xf32>
    %81 = arith.addf %77, %80 : vector<2x32xf32>
    %82 = math.tanh %81 : vector<2x32xf32>
    %cst_36 = arith.constant 1.000000e+00 : f32
    %83 = vector.broadcast %cst_36 : f32 to vector<2x32xf32>
    %84 = arith.subf %83, %76 : vector<2x32xf32>
    %85 = arith.mulf %84, %82 : vector<2x32xf32>
    %86 = arith.mulf %76, %61 : vector<2x32xf32>
    %87 = arith.addf %85, %86 : vector<2x32xf32>
    %c2_i32 = arith.constant 2 : i32
    %88 = arith.index_cast %c2_i32 : i32 to index
    %c0_37 = arith.constant 0 : index
    %c0_38 = arith.constant 0 : index
    %89 = vector.load %arg7[%88, %c0_37, %c0_38] : memref<8x2x96xf32, #tpu.memory_space<vmem>>, vector<1x2x96xf32>
    %90 = vector.shape_cast %89 : vector<1x2x96xf32> to vector<2x96xf32>
    %91 = arith.truncf %87 : vector<2x32xf32> to vector<2x32xbf16>
    %cst_39 = arith.constant dense<0.000000e+00> : vector<2x96xf32>
    %92 = tpu.matmul %91, %26, %cst_39 {dimension_numbers = #tpu.dot_dimension_numbers<[1], [0], [0], [1], [0, 0, 1, 1], [], []>} : vector<2x32xbf16>, vector<32x96xbf16>, vector<2x96xf32> -> vector<2x96xf32>
    %93 = vector.extract_strided_slice %90 {offsets = [0, 0], sizes = [2, 64], strides = [1, 1]} : vector<2x96xf32> to vector<2x64xf32>
    %94 = vector.extract_strided_slice %92 {offsets = [0, 0], sizes = [2, 64], strides = [1, 1]} : vector<2x96xf32> to vector<2x64xf32>
    %95 = arith.addf %93, %94 : vector<2x64xf32>
    %96 = arith.negf %95 : vector<2x64xf32>
    %97 = math.exp %96 : vector<2x64xf32>
    %cst_40 = arith.constant 1.000000e+00 : f32
    %98 = vector.broadcast %cst_40 : f32 to vector<2x64xf32>
    %99 = arith.addf %98, %97 : vector<2x64xf32>
    %100 = arith.divf %98, %99 : vector<2x64xf32>
    %101 = vector.extract_strided_slice %100 {offsets = [0, 0], sizes = [2, 32], strides = [1, 1]} : vector<2x64xf32> to vector<2x32xf32>
    %102 = vector.extract_strided_slice %100 {offsets = [0, 32], sizes = [2, 32], strides = [1, 1]} : vector<2x64xf32> to vector<2x32xf32>
    %103 = vector.extract_strided_slice %90 {offsets = [0, 64], sizes = [2, 32], strides = [1, 1]} : vector<2x96xf32> to vector<2x32xf32>
    %104 = vector.extract_strided_slice %92 {offsets = [0, 64], sizes = [2, 32], strides = [1, 1]} : vector<2x96xf32> to vector<2x32xf32>
    %105 = arith.addf %104, %6 : vector<2x32xf32>
    %106 = arith.mulf %101, %105 : vector<2x32xf32>
    %107 = arith.addf %103, %106 : vector<2x32xf32>
    %108 = math.tanh %107 : vector<2x32xf32>
    %cst_41 = arith.constant 1.000000e+00 : f32
    %109 = vector.broadcast %cst_41 : f32 to vector<2x32xf32>
    %110 = arith.subf %109, %102 : vector<2x32xf32>
    %111 = arith.mulf %110, %108 : vector<2x32xf32>
    %112 = arith.mulf %102, %87 : vector<2x32xf32>
    %113 = arith.addf %111, %112 : vector<2x32xf32>
    %c3_i32 = arith.constant 3 : i32
    %114 = arith.index_cast %c3_i32 : i32 to index
    %c0_42 = arith.constant 0 : index
    %c0_43 = arith.constant 0 : index
    %115 = vector.load %arg7[%114, %c0_42, %c0_43] : memref<8x2x96xf32, #tpu.memory_space<vmem>>, vector<1x2x96xf32>
    %116 = vector.shape_cast %115 : vector<1x2x96xf32> to vector<2x96xf32>
    %117 = arith.truncf %113 : vector<2x32xf32> to vector<2x32xbf16>
    %cst_44 = arith.constant dense<0.000000e+00> : vector<2x96xf32>
    %118 = tpu.matmul %117, %26, %cst_44 {dimension_numbers = #tpu.dot_dimension_numbers<[1], [0], [0], [1], [0, 0, 1, 1], [], []>} : vector<2x32xbf16>, vector<32x96xbf16>, vector<2x96xf32> -> vector<2x96xf32>
    %119 = vector.extract_strided_slice %116 {offsets = [0, 0], sizes = [2, 64], strides = [1, 1]} : vector<2x96xf32> to vector<2x64xf32>
    %120 = vector.extract_strided_slice %118 {offsets = [0, 0], sizes = [2, 64], strides = [1, 1]} : vector<2x96xf32> to vector<2x64xf32>
    %121 = arith.addf %119, %120 : vector<2x64xf32>
    %122 = arith.negf %121 : vector<2x64xf32>
    %123 = math.exp %122 : vector<2x64xf32>
    %cst_45 = arith.constant 1.000000e+00 : f32
    %124 = vector.broadcast %cst_45 : f32 to vector<2x64xf32>
    %125 = arith.addf %124, %123 : vector<2x64xf32>
    %126 = arith.divf %124, %125 : vector<2x64xf32>
    %127 = vector.extract_strided_slice %126 {offsets = [0, 0], sizes = [2, 32], strides = [1, 1]} : vector<2x64xf32> to vector<2x32xf32>
    %128 = vector.extract_strided_slice %126 {offsets = [0, 32], sizes = [2, 32], strides = [1, 1]} : vector<2x64xf32> to vector<2x32xf32>
    %129 = vector.extract_strided_slice %116 {offsets = [0, 64], sizes = [2, 32], strides = [1, 1]} : vector<2x96xf32> to vector<2x32xf32>
    %130 = vector.extract_strided_slice %118 {offsets = [0, 64], sizes = [2, 32], strides = [1, 1]} : vector<2x96xf32> to vector<2x32xf32>
    %131 = arith.addf %130, %6 : vector<2x32xf32>
    %132 = arith.mulf %127, %131 : vector<2x32xf32>
    %133 = arith.addf %129, %132 : vector<2x32xf32>
    %134 = math.tanh %133 : vector<2x32xf32>
    %cst_46 = arith.constant 1.000000e+00 : f32
    %135 = vector.broadcast %cst_46 : f32 to vector<2x32xf32>
    %136 = arith.subf %135, %128 : vector<2x32xf32>
    %137 = arith.mulf %136, %134 : vector<2x32xf32>
    %138 = arith.mulf %128, %113 : vector<2x32xf32>
    %139 = arith.addf %137, %138 : vector<2x32xf32>
    %c4_i32 = arith.constant 4 : i32
    %140 = arith.index_cast %c4_i32 : i32 to index
    %c0_47 = arith.constant 0 : index
    %c0_48 = arith.constant 0 : index
    %141 = vector.load %arg7[%140, %c0_47, %c0_48] : memref<8x2x96xf32, #tpu.memory_space<vmem>>, vector<1x2x96xf32>
    %142 = vector.shape_cast %141 : vector<1x2x96xf32> to vector<2x96xf32>
    %143 = arith.truncf %139 : vector<2x32xf32> to vector<2x32xbf16>
    %cst_49 = arith.constant dense<0.000000e+00> : vector<2x96xf32>
    %144 = tpu.matmul %143, %26, %cst_49 {dimension_numbers = #tpu.dot_dimension_numbers<[1], [0], [0], [1], [0, 0, 1, 1], [], []>} : vector<2x32xbf16>, vector<32x96xbf16>, vector<2x96xf32> -> vector<2x96xf32>
    %145 = vector.extract_strided_slice %142 {offsets = [0, 0], sizes = [2, 64], strides = [1, 1]} : vector<2x96xf32> to vector<2x64xf32>
    %146 = vector.extract_strided_slice %144 {offsets = [0, 0], sizes = [2, 64], strides = [1, 1]} : vector<2x96xf32> to vector<2x64xf32>
    %147 = arith.addf %145, %146 : vector<2x64xf32>
    %148 = arith.negf %147 : vector<2x64xf32>
    %149 = math.exp %148 : vector<2x64xf32>
    %cst_50 = arith.constant 1.000000e+00 : f32
    %150 = vector.broadcast %cst_50 : f32 to vector<2x64xf32>
    %151 = arith.addf %150, %149 : vector<2x64xf32>
    %152 = arith.divf %150, %151 : vector<2x64xf32>
    %153 = vector.extract_strided_slice %152 {offsets = [0, 0], sizes = [2, 32], strides = [1, 1]} : vector<2x64xf32> to vector<2x32xf32>
    %154 = vector.extract_strided_slice %152 {offsets = [0, 32], sizes = [2, 32], strides = [1, 1]} : vector<2x64xf32> to vector<2x32xf32>
    %155 = vector.extract_strided_slice %142 {offsets = [0, 64], sizes = [2, 32], strides = [1, 1]} : vector<2x96xf32> to vector<2x32xf32>
    %156 = vector.extract_strided_slice %144 {offsets = [0, 64], sizes = [2, 32], strides = [1, 1]} : vector<2x96xf32> to vector<2x32xf32>
    %157 = arith.addf %156, %6 : vector<2x32xf32>
    %158 = arith.mulf %153, %157 : vector<2x32xf32>
    %159 = arith.addf %155, %158 : vector<2x32xf32>
    %160 = math.tanh %159 : vector<2x32xf32>
    %cst_51 = arith.constant 1.000000e+00 : f32
    %161 = vector.broadcast %cst_51 : f32 to vector<2x32xf32>
    %162 = arith.subf %161, %154 : vector<2x32xf32>
    %163 = arith.mulf %162, %160 : vector<2x32xf32>
    %164 = arith.mulf %154, %139 : vector<2x32xf32>
    %165 = arith.addf %163, %164 : vector<2x32xf32>
    %c5_i32 = arith.constant 5 : i32
    %166 = arith.index_cast %c5_i32 : i32 to index
    %c0_52 = arith.constant 0 : index
    %c0_53 = arith.constant 0 : index
    %167 = vector.load %arg7[%166, %c0_52, %c0_53] : memref<8x2x96xf32, #tpu.memory_space<vmem>>, vector<1x2x96xf32>
    %168 = vector.shape_cast %167 : vector<1x2x96xf32> to vector<2x96xf32>
    %169 = arith.truncf %165 : vector<2x32xf32> to vector<2x32xbf16>
    %cst_54 = arith.constant dense<0.000000e+00> : vector<2x96xf32>
    %170 = tpu.matmul %169, %26, %cst_54 {dimension_numbers = #tpu.dot_dimension_numbers<[1], [0], [0], [1], [0, 0, 1, 1], [], []>} : vector<2x32xbf16>, vector<32x96xbf16>, vector<2x96xf32> -> vector<2x96xf32>
    %171 = vector.extract_strided_slice %168 {offsets = [0, 0], sizes = [2, 64], strides = [1, 1]} : vector<2x96xf32> to vector<2x64xf32>
    %172 = vector.extract_strided_slice %170 {offsets = [0, 0], sizes = [2, 64], strides = [1, 1]} : vector<2x96xf32> to vector<2x64xf32>
    %173 = arith.addf %171, %172 : vector<2x64xf32>
    %174 = arith.negf %173 : vector<2x64xf32>
    %175 = math.exp %174 : vector<2x64xf32>
    %cst_55 = arith.constant 1.000000e+00 : f32
    %176 = vector.broadcast %cst_55 : f32 to vector<2x64xf32>
    %177 = arith.addf %176, %175 : vector<2x64xf32>
    %178 = arith.divf %176, %177 : vector<2x64xf32>
    %179 = vector.extract_strided_slice %178 {offsets = [0, 0], sizes = [2, 32], strides = [1, 1]} : vector<2x64xf32> to vector<2x32xf32>
    %180 = vector.extract_strided_slice %178 {offsets = [0, 32], sizes = [2, 32], strides = [1, 1]} : vector<2x64xf32> to vector<2x32xf32>
    %181 = vector.extract_strided_slice %168 {offsets = [0, 64], sizes = [2, 32], strides = [1, 1]} : vector<2x96xf32> to vector<2x32xf32>
    %182 = vector.extract_strided_slice %170 {offsets = [0, 64], sizes = [2, 32], strides = [1, 1]} : vector<2x96xf32> to vector<2x32xf32>
    %183 = arith.addf %182, %6 : vector<2x32xf32>
    %184 = arith.mulf %179, %183 : vector<2x32xf32>
    %185 = arith.addf %181, %184 : vector<2x32xf32>
    %186 = math.tanh %185 : vector<2x32xf32>
    %cst_56 = arith.constant 1.000000e+00 : f32
    %187 = vector.broadcast %cst_56 : f32 to vector<2x32xf32>
    %188 = arith.subf %187, %180 : vector<2x32xf32>
    %189 = arith.mulf %188, %186 : vector<2x32xf32>
    %190 = arith.mulf %180, %165 : vector<2x32xf32>
    %191 = arith.addf %189, %190 : vector<2x32xf32>
    %c6_i32 = arith.constant 6 : i32
    %192 = arith.index_cast %c6_i32 : i32 to index
    %c0_57 = arith.constant 0 : index
    %c0_58 = arith.constant 0 : index
    %193 = vector.load %arg7[%192, %c0_57, %c0_58] : memref<8x2x96xf32, #tpu.memory_space<vmem>>, vector<1x2x96xf32>
    %194 = vector.shape_cast %193 : vector<1x2x96xf32> to vector<2x96xf32>
    %195 = arith.truncf %191 : vector<2x32xf32> to vector<2x32xbf16>
    %cst_59 = arith.constant dense<0.000000e+00> : vector<2x96xf32>
    %196 = tpu.matmul %195, %26, %cst_59 {dimension_numbers = #tpu.dot_dimension_numbers<[1], [0], [0], [1], [0, 0, 1, 1], [], []>} : vector<2x32xbf16>, vector<32x96xbf16>, vector<2x96xf32> -> vector<2x96xf32>
    %197 = vector.extract_strided_slice %194 {offsets = [0, 0], sizes = [2, 64], strides = [1, 1]} : vector<2x96xf32> to vector<2x64xf32>
    %198 = vector.extract_strided_slice %196 {offsets = [0, 0], sizes = [2, 64], strides = [1, 1]} : vector<2x96xf32> to vector<2x64xf32>
    %199 = arith.addf %197, %198 : vector<2x64xf32>
    %200 = arith.negf %199 : vector<2x64xf32>
    %201 = math.exp %200 : vector<2x64xf32>
    %cst_60 = arith.constant 1.000000e+00 : f32
    %202 = vector.broadcast %cst_60 : f32 to vector<2x64xf32>
    %203 = arith.addf %202, %201 : vector<2x64xf32>
    %204 = arith.divf %202, %203 : vector<2x64xf32>
    %205 = vector.extract_strided_slice %204 {offsets = [0, 0], sizes = [2, 32], strides = [1, 1]} : vector<2x64xf32> to vector<2x32xf32>
    %206 = vector.extract_strided_slice %204 {offsets = [0, 32], sizes = [2, 32], strides = [1, 1]} : vector<2x64xf32> to vector<2x32xf32>
    %207 = vector.extract_strided_slice %194 {offsets = [0, 64], sizes = [2, 32], strides = [1, 1]} : vector<2x96xf32> to vector<2x32xf32>
    %208 = vector.extract_strided_slice %196 {offsets = [0, 64], sizes = [2, 32], strides = [1, 1]} : vector<2x96xf32> to vector<2x32xf32>
    %209 = arith.addf %208, %6 : vector<2x32xf32>
    %210 = arith.mulf %205, %209 : vector<2x32xf32>
    %211 = arith.addf %207, %210 : vector<2x32xf32>
    %212 = math.tanh %211 : vector<2x32xf32>
    %cst_61 = arith.constant 1.000000e+00 : f32
    %213 = vector.broadcast %cst_61 : f32 to vector<2x32xf32>
    %214 = arith.subf %213, %206 : vector<2x32xf32>
    %215 = arith.mulf %214, %212 : vector<2x32xf32>
    %216 = arith.mulf %206, %191 : vector<2x32xf32>
    %217 = arith.addf %215, %216 : vector<2x32xf32>
    %c7_i32 = arith.constant 7 : i32
    %218 = arith.index_cast %c7_i32 : i32 to index
    %c0_62 = arith.constant 0 : index
    %c0_63 = arith.constant 0 : index
    %219 = vector.load %arg7[%218, %c0_62, %c0_63] : memref<8x2x96xf32, #tpu.memory_space<vmem>>, vector<1x2x96xf32>
    %220 = vector.shape_cast %219 : vector<1x2x96xf32> to vector<2x96xf32>
    %221 = arith.truncf %217 : vector<2x32xf32> to vector<2x32xbf16>
    %cst_64 = arith.constant dense<0.000000e+00> : vector<2x96xf32>
    %222 = tpu.matmul %221, %26, %cst_64 {dimension_numbers = #tpu.dot_dimension_numbers<[1], [0], [0], [1], [0, 0, 1, 1], [], []>} : vector<2x32xbf16>, vector<32x96xbf16>, vector<2x96xf32> -> vector<2x96xf32>
    %223 = vector.extract_strided_slice %220 {offsets = [0, 0], sizes = [2, 64], strides = [1, 1]} : vector<2x96xf32> to vector<2x64xf32>
    %224 = vector.extract_strided_slice %222 {offsets = [0, 0], sizes = [2, 64], strides = [1, 1]} : vector<2x96xf32> to vector<2x64xf32>
    %225 = arith.addf %223, %224 : vector<2x64xf32>
    %226 = arith.negf %225 : vector<2x64xf32>
    %227 = math.exp %226 : vector<2x64xf32>
    %cst_65 = arith.constant 1.000000e+00 : f32
    %228 = vector.broadcast %cst_65 : f32 to vector<2x64xf32>
    %229 = arith.addf %228, %227 : vector<2x64xf32>
    %230 = arith.divf %228, %229 : vector<2x64xf32>
    %231 = vector.extract_strided_slice %230 {offsets = [0, 0], sizes = [2, 32], strides = [1, 1]} : vector<2x64xf32> to vector<2x32xf32>
    %232 = vector.extract_strided_slice %230 {offsets = [0, 32], sizes = [2, 32], strides = [1, 1]} : vector<2x64xf32> to vector<2x32xf32>
    %233 = vector.extract_strided_slice %220 {offsets = [0, 64], sizes = [2, 32], strides = [1, 1]} : vector<2x96xf32> to vector<2x32xf32>
    %234 = vector.extract_strided_slice %222 {offsets = [0, 64], sizes = [2, 32], strides = [1, 1]} : vector<2x96xf32> to vector<2x32xf32>
    %235 = arith.addf %234, %6 : vector<2x32xf32>
    %236 = arith.mulf %231, %235 : vector<2x32xf32>
    %237 = arith.addf %233, %236 : vector<2x32xf32>
    %238 = math.tanh %237 : vector<2x32xf32>
    %cst_66 = arith.constant 1.000000e+00 : f32
    %239 = vector.broadcast %cst_66 : f32 to vector<2x32xf32>
    %240 = arith.subf %239, %232 : vector<2x32xf32>
    %241 = arith.mulf %240, %238 : vector<2x32xf32>
    %242 = arith.mulf %232, %217 : vector<2x32xf32>
    %243 = arith.addf %241, %242 : vector<2x32xf32>
    %c8_i32 = arith.constant 8 : i32
    %244 = arith.truncf %22 : vector<2x32xf32> to vector<2x32xbf16>
    %c0_67 = arith.constant 0 : index
    %c0_68 = arith.constant 0 : index
    %245 = vector.load %arg4[%c0_67, %c0_68] : memref<64x32xbf16, #tpu.memory_space<vmem>>, vector<32x32xbf16>
    %cst_69 = arith.constant dense<0.000000e+00> : vector<2x32xf32>
    %246 = tpu.matmul %244, %245, %cst_69 {dimension_numbers = #tpu.dot_dimension_numbers<[1], [0], [0], [1], [0, 0, 1, 1], [], []>} : vector<2x32xbf16>, vector<32x32xbf16>, vector<2x32xf32> -> vector<2x32xf32>
    %247 = arith.truncf %243 : vector<2x32xf32> to vector<2x32xbf16>
    %c32 = arith.constant 32 : index
    %c0_70 = arith.constant 0 : index
    %248 = vector.load %arg4[%c32, %c0_70] : memref<64x32xbf16, #tpu.memory_space<vmem>>, vector<32x32xbf16>
    %cst_71 = arith.constant dense<0.000000e+00> : vector<2x32xf32>
    %249 = tpu.matmul %247, %248, %cst_71 {dimension_numbers = #tpu.dot_dimension_numbers<[1], [0], [0], [1], [0, 0, 1, 1], [], []>} : vector<2x32xbf16>, vector<32x32xbf16>, vector<2x32xf32> -> vector<2x32xf32>
    %250 = arith.addf %246, %249 : vector<2x32xf32>
    %251 = vector.broadcast %7 : vector<1x32xf32> to vector<2x32xf32>
    %252 = arith.addf %250, %251 : vector<2x32xf32>
    %253 = math.tanh %252 : vector<2x32xf32>
    %c0_72 = arith.constant 0 : index
    %c0_73 = arith.constant 0 : index
    %254 = vector.load %arg6[%c0_72, %c0_73] : memref<2x32xf32, #tpu.memory_space<vmem>>, vector<2x32xf32>
    tpu.vector_store %arg6[%c0_72, %c0_73], %253 {strides = array<i32>} : memref<2x32xf32, #tpu.memory_space<vmem>>, vector<2x32xf32>,
    return
  }
}

</mosaic_0001>

<bundles_post_ra>
// kernel: tpu_custom_call.1
= control target key start
LH: loop header
LB: loop body
LE: loop exit
PB: predicated region body
PF: predicated region fallthrough
CT: control target
= control target key end

     0   :  { %v221_v1 = vlaneseq  ;;  %v1493_v2 = vmov 0.0   ;;  %vm1494_vm0 = vmmov 0   ;;  %vm36_vm1 = vcmask 261120   ;;  %s1765_s0 = inlined_call_operand.vmem [shape: f32[2,8,32], index: 0, kind: input, shape index: {}]   ;;  %s1766_s1 = inlined_call_operand.vmem [shape: bf16[32,64], index: 1, kind: input, shape index: {}]   ;;  %s1767_s2 = inlined_call_operand.vmem [shape: bf16[64,32], index: 2, kind: input, shape index: {}]   ;;  %s1768_s3 = inlined_call_operand.vmem [shape: bf16[2,32,96], index: 3, kind: input, shape index: {}]   ;;  %s1769_s4 = inlined_call_operand.vmem [shape: bf16[64,32], index: 4, kind: input, shape index: {}]   ;;  %s1770_s5 = inlined_call_operand.vmem [shape: f32[8,128], index: 5, kind: input, shape index: {}]   ;;  %s1771_s6 = inlined_call_operand.hbm [shape: f32[2,32], index: 6, kind: output, shape index: {}]  }
   0x1   :  { %v1407_v0 = vld [vmem:[%s1766_s1 + $0x8] sm:$0xff]   ;;  %1291 = vmatprep.subr.bf16.mxu0 %v1493_v2  ;;  %1299 = vmatprep.subr.bf16.mxu1 %v1493_v2  ;;  %v1408_v3 = vld [vmem:[%s1766_s1] sm:$0xff]   ;;  %v1495_v8 = vmov 1983009808   ;;  %v1496_v20 = vmov 1934713408  }
   0x2   :  { %1292 = vmatpush3.bf16.msra.mxu0 %v1407_v0  ;;  %1295 = vmatprep.mubr.msk.bf16.mxu0 %vm1494_vm0, %v1493_v2  ;;  %v25_v4 = vld [vmem:[%s1765_s0] sm:$0xff]  ;;  %v26_v5 = vld [vmem:[%s1765_s0 + $0x8] sm:$0xff]  ;;  %v219_v9 = vunpack.c.l.s4 %v1495_v8  ;;  %v222_v12 = vshrl.u32 %v221_v1, 7  ;;  %v251_v21 = vunpack.c.l.s4 %v1496_v20  ;;  %v1413_v29 = vld [vmem:[%s1767_s2 + $0x18] sm:$0xff]  }
   0x3   :  { %1293 = vmatprep.subr.bf16.mxu0 %v1493_v2  ;;  %v37_v6 = vsel %vm36_vm1, %v25_v4, 0.0  ;;  %v44_v7 = vsel %vm36_vm1, %v26_v5, 0.0  ;;  %1307 = vmatprep.mubr.msk.bf16.mxu1 %vm1494_vm0, %v1493_v2  ;;  %v217_v13 = vcombine.high %v25_v4, %v1493_v2  ;;  %v233_v15 = vcombine.high %v26_v5, %v1493_v2  ;;  %v1221_v18 = vld.sshfl [vmem:[%s1765_s0 + $0x8] sm:$0xff pattern:$0x76325410]  ;;  %s1497_s0 = smov 64  }
   0x4   :  { %v38_v10 = vrot.slane %v37_v6, 4  ;;  %v45_v11 = vrot.slane %v44_v7, 4  ;;  %v220_v14 = vunpack.c.0.s8 %v219_v9  ;;  %v1206_v24 = vld [vmem:[%s1770_s5 + $0x3] ss:$0 sm:$0xff]  ;;  %v252_v28 = vunpack.c.0.s8 %v251_v21  ;;  %1300 = vmatpush3.bf16.msra.mxu1 %v1413_v29  ;;  %v1414_v36 = vld [vmem:[%s1767_s2 + $0x10] sm:$0xff]  }
   0x5   :  { %506 = vrot.lane.b32.xlu0 %v1206_v24, %s1497_s0  ;;  %1301 = vmatprep.subr.bf16.mxu1 %v1493_v2 }
   0x6   :  { %1294 = vmatpush3.bf16.msra.mxu0 %v1408_v3  ;;  %v39_v16 = vadd.f32 %v38_v10, %v37_v6  ;;  %v46_v17 = vadd.f32 %v45_v11, %v44_v7  ;;  %v1563_v19 = vsub.s32 %v220_v14, %v222_v12  ;;  %v255_v34 = vsub.s32 %v252_v28, %v222_v12 }
   0x7   :  { %1311 = vmatprep.subr.bf16.mxu0 %v1493_v2 }
   0x8   :  { %v40_v22 = vrot.slane %v39_v16, 2  ;;  %v47_v23 = vrot.slane %v46_v17, 2  ;;  %v224_v25 = vrot.slane %v25_v4, %v1563_v19  ;;  %v247_v26 = vrot.slane %v233_v15, %v1563_v19  ;;  %1302 = vmatpush3.bf16.msra.mxu1 %v1414_v36 }
   0x9   :  { %v231_v27 = vrot.slane %v217_v13, %v1563_v19 }
   0xa   :  { %v41_v30 = vadd.f32 %v40_v22, %v39_v16  ;;  %v48_v31 = vadd.f32 %v47_v23, %v46_v17  ;;  %v248_v32 = vcombine.low %v224_v25, %v1221_v18  ;;  %v249_v33 = vcombine.high %v224_v25, %v1221_v18 }
   0xb   :  { %v264_v35 = vcombine.low %v231_v27, %v247_v26  ;;  %v265_v39 = vcombine.high %v231_v27, %v247_v26 }
   0xc   :  { %v42_v37 = vrot.slane %v41_v30, 1  ;;  %v49_v38 = vrot.slane %v48_v31, 1  ;;  %v256_v40 = vrot.slane %v248_v32, %v255_v34  ;;  %v263_v41 = vrot.slane %v249_v33, %v255_v34 }
   0xd   :  { %v272_v42 = vrot.slane %v264_v35, %v255_v34  ;;  %v279_v45 = vrot.slane %v265_v39, %v255_v34 }
   0xe   :  { %v43_v43 = vadd.f32 %v42_v37, %v41_v30  ;;  %v50_v44 = vadd.f32 %v49_v38, %v48_v31  ;;  %v280_v46 = vcombine.high %v256_v40, %v1493_v2  ;;  %v281_v47 = vcombine.high %v263_v41, %v1493_v2 }
   0xf   :  { %v282_v48 = vcombine.high %v272_v42, %v1493_v2 }
  0x10   :  { %11 = vsyncpa [#allocation4], 0  ;;  %v52_v49 = vmul.f32 0.125, %v43_v43  ;;  %v53_v50 = vmul.f32 0.125, %v50_v44  ;;  %v283_v51 = vcombine.high %v279_v45, %v1493_v2  ;;  %1303 = vmatprep.subr.bf16.mxu1 %v1493_v2  ;;  %v292_v52 = vcombine.low %v256_v40, %v280_v46  ;;  %v1409_v1 = vld [vmem:[%s1768_s3 + $0x8] sm:$0xff]   ;;  %v1410_v6 = vld [vmem:[%s1768_s3] sm:$0xff]  }
  0x11   :  { %v293_v53 = vcombine.low %v263_v41, %v281_v47  ;;  %v309_v54 = vcombine.low %v272_v42, %v282_v48  ;;  %vm68_vm2 = vcmask 1041409   ;;  %v1601_v8 = vld [vmem:[%s1768_s3 + $0x18] sm:$0xff]   ;;  %v1609_v9 = vld [vmem:[%s1768_s3 + $0x10] sm:$0xff]   ;;  %v1498_v10 = vmov 0   ;;  %v1415_v11 = vld [vmem:[%s1767_s2 + $0x8] sm:$0xff]  }
  0x12   :  { %v54_v55 = vpack.c.bf16 %v52_v49, %v52_v49  ;;  %v55_v56 = vpack.c.bf16 %v53_v50, %v53_v50  ;;  %v310_v57 = vcombine.low %v279_v45, %v283_v51  ;;  %v300_v60 = vrot.slane %v292_v52, %v1563_v19  ;;  %1304 = vmatpush3.bf16.msra.mxu1 %v1415_v11  ;;  %v1416_v12 = vld [vmem:[%s1767_s2] sm:$0xff]   ;;  %s1499_s2 = smov 96  }
  0x13   :  { %v307_v61 = vrot.slane %v293_v53, %v1563_v19  ;;  %v317_v62 = vrot.slane %v309_v54, %v1563_v19  ;;  %1305 = vmatprep.subr.bf16.mxu1 %v1493_v2  ;;  %v1207_v13 = vld [vmem:[%s1770_s5] ss:$0 sm:$0xff]  ;;  %vm164_vm3 = vcmask 523264   ;;  %v1222_v22 = vld [vmem:[%s1770_s5 + $0x2] ss:$0 sm:$0xff]  ;;  %vm433_vm4 = vcmask 779264  }
  0x14   :  { %v66_v58 = vunpack.c.l.b16 %v54_v55  ;;  %v67_v59 = vunpack.c.l.b16 %v55_v56  ;;  %v324_v63 = vrot.slane %v310_v57, %v1563_v19  ;;  %vm1190_vm5 = vcmask 254976  }
  0x15   :  { %v308_v4 = vcombine.low %v300_v60, %v307_v61 }
  0x16   :  { %v69_v0 = vsel %vm68_vm2, %v67_v59, %v66_v58  ;;  %v325_v5 = vcombine.low %v317_v62, %v324_v63  ;;  %1306 = vmatpush3.bf16.msra.mxu1 %v1416_v12 }
  0x17   :  { %v70_v3 = vpack.c.b16 %v69_v0, %v69_v0  ;;  %1327 = vmatprep.subr.bf16.mxu1 %v1493_v2 }
  0x18   :  { %v328_v7 = vpack.c.bf16 %v325_v5, %v308_v4 }
  0x19   :  { %1296 = vmatmul.mubr.msk.bf16.vlgmr.msra.gmra.mxu0 %vm36_vm1, %v70_v3 }
  0x1a   :  { %1312 = vmatpush3.bf16.msra.mxu0 %v1409_v1  ;;  %1315 = vmatprep.mubr.msk.bf16.mxu0 %vm1494_vm0, %v1493_v2 }
  0x1b   :  { %1313 = vmatprep.subr.bf16.mxu0 %v1493_v2 }
  0x1e   :  { %1314 = vmatpush3.bf16.msra.mxu0 %v1410_v6 }
  0x1f   :  { %1319 = vmatprep.subr.bf16.mxu0 %v1493_v2 }
  0x21   :  { %1316 = vmatmul.mubr.msk.bf16.vlgmr.msra.gmra.mxu0 %vm36_vm1, %v328_v7 }
  0x22   :  { %1320 = vmatpush3.bf16.msra.mxu0 %v1601_v8  ;;  %1323 = vmatprep.mubr.msk.bf16.mxu0 %vm1494_vm0, %v1493_v2 }
  0x23   :  { %1321 = vmatprep.subr.bf16.mxu0 %v1493_v2 }
  0x26   :  { %1322 = vmatpush3.bf16.msra.mxu0 %v1609_v9 }
  0x27   :  { %1335 = vmatprep.subr.bf16.mxu0 %v1493_v2 }
  0x29   :  { %1324 = vmatmul.mubr.bf16.vlgmr.msra.gmra.mxu0 %v1498_v10 }
  0x2a   :  { %1336 = vmatpush3.bf16.msra.mxu0 %v1601_v8  ;;  %1339 = vmatprep.mubr.msk.bf16.mxu0 %vm1494_vm0, %v1493_v2 }
  0x2b   :  { %1337 = vmatprep.subr.bf16.mxu0 %v1493_v2 }
  0x2e   :  { %1338 = vmatpush3.bf16.msra.mxu0 %v1609_v9 }
  0x2f   :  { %1351 = vmatprep.subr.bf16.mxu0 %v1493_v2 }
  0x77   :  { %v1645_v33 = vpop.permute.xlu0 %506 }
  0xd9   :  { %v120_v14 = vpop.f32.mrf.mxu0 }
  0xda   :  { %v121_v15 = vadd.f32 %v1207_v13, %v120_v14 }
  0xdb   :  { %v1297_v16 = vpop.f32.mrf.mxu0 }
  0xdc   :  { %v126_v17 = vmax.f32 %v121_v15, 0.0 }
  0xdd   :  { %v123_v18 = vpop.f32.mrf.mxu0 }
  0xde   :  { %v127_v20 = vpack.c.bf16 %v126_v17, %v126_v17 }
  0xdf   :  { %v1298_v21 = vpop.f32.mrf.mxu0 }
  0xe0   :  { %1308 = vmatmul.mubr.msk.bf16.vlgmr.msra.gmra.mxu1 %vm164_vm3, %v127_v20 }
  0xe1   :  { %v382_v23 = vpop.f32.mrf.mxu0  ;;  %1328 = vmatpush3.bf16.msra.mxu1 %v1601_v8  ;;  %1331 = vmatprep.mubr.msk.bf16.mxu1 %vm1494_vm0, %v1493_v2 }
  0xe2   :  { %v383_v24 = vadd.f32 %v1222_v22, %v382_v23  ;;  %1329 = vmatprep.subr.bf16.mxu1 %v1493_v2 }
  0xe3   :  { %v1317_v25 = vpop.f32.mrf.mxu0 }
  0xe4   :  { %v391_v26 = vcombine.high %v383_v24, %v383_v24  ;;  %v398_v27 = vrot.slane %v383_v24, %v1563_v19 }
  0xe5   :  { %v385_v28 = vpop.f32.mrf.mxu0  ;;  %1330 = vmatpush3.bf16.msra.mxu1 %v1609_v9 }
  0xe6   :  { %v405_v29 = vrot.slane %v391_v26, %v1563_v19  ;;  %v406_v30 = vcombine.high %v398_v27, %v398_v27  ;;  %434 = vst.msk [vmem:[#allocation2] sm:$0x3] %vm433_vm4, %v398_v27  ;;  %v386_v31 = vadd.f32 %v1222_v22, %v385_v28  ;;  %1343 = vmatprep.subr.bf16.mxu1 %v1493_v2 }
  0xe7   :  { %v1318_v32 = vpop.f32.mrf.mxu0 }
  0xe8   :  { %v407_v34 = vcombine.high %v405_v29, %v405_v29  ;;  %435 = vst.msk [vmem:[#allocation2 + $0x2] sm:$0x3] %vm433_vm4, %v406_v30  ;;  %436 = vst.msk [vmem:[#allocation2 + $0x4] sm:$0x3] %vm433_vm4, %v405_v29  ;;  %v408_v35 = vcombine.high %v386_v31, %v386_v31  ;;  %v415_v36 = vrot.slane %v386_v31, %v1563_v19 }
  0xe9   :  { %v492_v37 = vpop.f32.mrf.mxu0 }
  0xea   :  { %437 = vst.msk [vmem:[#allocation2 + $0x6] sm:$0x3] %vm433_vm4, %v407_v34  ;;  %v422_v38 = vrot.slane %v408_v35, %v1563_v19  ;;  %v423_v39 = vcombine.high %v415_v36, %v415_v36  ;;  %438 = vst.msk [vmem:[#allocation2 + $0x8] sm:$0x3] %vm433_vm4, %v415_v36  ;;  %v509_v40 = vadd.f32 %v1645_v33, %v492_v37 }
  0xeb   :  { %v1325_v41 = vpop.f32.mrf.mxu0 }
  0xec   :  { %v424_v42 = vcombine.high %v422_v38, %v422_v38  ;;  %439 = vst.msk [vmem:[#allocation2 + $0xa] sm:$0x3] %vm433_vm4, %v423_v39  ;;  %440 = vst.msk [vmem:[#allocation2 + $0xc] sm:$0x3] %vm433_vm4, %v422_v38  ;;  %511 = vrot.lane.b32.xlu0 %v509_v40, %s1497_s0 }
  0xed   :  { %v495_v43 = vpop.f32.mrf.mxu0  ;;  %v442_v45 = vld [vmem:[#allocation2] sm:$0x3] }
  0xee   :  { %441 = vst.msk [vmem:[#allocation2 + $0xe] sm:$0x3] %vm433_vm4, %v424_v42  ;;  %v498_v46 = vadd.f32 %v492_v37, %v442_v45 }
  0xef   :  { %v1326_v44 = vpop.f32.mrf.mxu0  ;;  %v530_v10 = vld [vmem:[#allocation2 + $0x2] sm:$0x3]  ;;  %v606_v35 = vld [vmem:[#allocation2 + $0x4] sm:$0x3] }
  0xf0   :  { %v1228_v19 = vmul.f32 -1.442695, %v498_v46 }
  0xf2   :  { %1421 = vpow2.f32 %v1228_v19 }
  0xff   :  { %v1422_v47 = vpop.eup %1421 }
 0x100   :  { %v502_v48 = vadd.f32 1.0, %v1422_v47 }
 0x102   :  { %1423 = vrcp.f32 %v502_v48 }
 0x10f   :  { %v1424_v49 = vpop.eup %1423 }
 0x110   :  { %v521_v59 = vsub.f32 1.0, %v1424_v49  ;;  %v527_v61 = vmul.f32 0.0, %v1424_v49 }
 0x15e   :  { %v512_v50 = vpop.permute.xlu0 %511 }
 0x15f   :  { %v514_v51 = vmul.f32 %v1424_v49, %v512_v50 }
 0x161   :  { %516 = vrot.lane.b32.xlu1 %v514_v51, %s1497_s0 }
 0x1a0   :  { %v1659_v52 = vpop.f32.mrf.mxu1 }
 0x1a2   :  { %v1309_v53 = vpop.f32.mrf.mxu1 }
 0x1a4   :  { %v205_v54 = vpop.f32.mrf.mxu1 }
 0x1a6   :  { %v1310_v55 = vpop.f32.mrf.mxu1 }
 0x1d3   :  { %v517_v56 = vpop.permute.xlu1 %516 }
 0x1d4   :  { %v519_v57 = vadd.f32 %v517_v56, %v442_v45 }
 0x1d6   :  { %1425 = vtanh.f32 %v519_v57 }
 0x1e3   :  { %v1426_v58 = vpop.eup %1425 }
 0x1e4   :  { %523 = vrot.lane.b32.xlu1 %v1426_v58, %s1499_s2  ;;  %v682_v58 = vld [vmem:[#allocation2 + $0x6] sm:$0x3] }
 0x256   :  { %v524_v60 = vpop.permute.xlu1 %523 }
 0x257   :  { %v526_v62 = vmul.f32 %v524_v60, %v521_v59 }
 0x259   :  { %v528_v63 = vadd.f32 %v527_v61, %v526_v62 }
 0x25b   :  { %v531_v0 = vpack.c.bf16 %v528_v63, %v528_v63 }
 0x25d   :  { %533 = vrot.lane.b32.xlu0 %v531_v0, %s1499_s2 }
 0x2cf   :  { %v534_v1 = vpop.permute.xlu0 %533 }
 0x2d0   :  { %1332 = vmatmul.mubr.msk.bf16.vlgmr.msra.gmra.mxu1 %vm36_vm1, %v534_v1 }
 0x2d1   :  { %1344 = vmatpush3.bf16.msra.mxu1 %v1601_v8  ;;  %1347 = vmatprep.mubr.msk.bf16.mxu1 %vm1494_vm0, %v1493_v2 }
 0x2d2   :  { %1345 = vmatprep.subr.bf16.mxu1 %v1493_v2 }
 0x2d5   :  { %1346 = vmatpush3.bf16.msra.mxu1 %v1609_v9 }
 0x2d6   :  { %1359 = vmatprep.subr.bf16.mxu1 %v1493_v2 }
 0x390   :  { %v572_v3 = vpop.f32.mrf.mxu1 }
 0x391   :  { %v585_v4 = vadd.f32 %v572_v3, %v1645_v33  ;;  %v578_v11 = vadd.f32 %v572_v3, %v530_v10 }
 0x392   :  { %v1333_v5 = vpop.f32.mrf.mxu1 }
 0x393   :  { %587 = vrot.lane.b32.xlu1 %v585_v4, %s1497_s0  ;;  %v1230_v12 = vmul.f32 -1.442695, %v578_v11 }
 0x394   :  { %v575_v6 = vpop.f32.mrf.mxu1 }
 0x395   :  { %1427 = vpow2.f32 %v1230_v12 }
 0x396   :  { %v1334_v7 = vpop.f32.mrf.mxu1 }
 0x3a2   :  { %v1428_v13 = vpop.eup %1427 }
 0x3a3   :  { %v582_v14 = vadd.f32 1.0, %v1428_v13 }
 0x3a5   :  { %1429 = vrcp.f32 %v582_v14 }
 0x3b2   :  { %v1430_v15 = vpop.eup %1429 }
 0x3b3   :  { %v597_v22 = vsub.f32 1.0, %v1430_v15  ;;  %v603_v24 = vmul.f32 %v1430_v15, %v528_v63 }
 0x405   :  { %v588_v16 = vpop.permute.xlu1 %587 }
 0x406   :  { %v590_v17 = vmul.f32 %v1430_v15, %v588_v16 }
 0x408   :  { %592 = vrot.lane.b32.xlu0 %v590_v17, %s1497_s0 }
 0x47a   :  { %v593_v18 = vpop.permute.xlu0 %592 }
 0x47b   :  { %v595_v20 = vadd.f32 %v593_v18, %v530_v10 }
 0x47d   :  { %1431 = vtanh.f32 %v595_v20 }
 0x48a   :  { %v1432_v21 = vpop.eup %1431 }
 0x48b   :  { %599 = vrot.lane.b32.xlu1 %v1432_v21, %s1499_s2  ;;  %v758_v21 = vld [vmem:[#allocation2 + $0x8] sm:$0x3] }
 0x4fd   :  { %v600_v23 = vpop.permute.xlu1 %599 }
 0x4fe   :  { %v602_v25 = vmul.f32 %v600_v23, %v597_v22 }
 0x500   :  { %v604_v26 = vadd.f32 %v603_v24, %v602_v25 }
 0x502   :  { %v607_v27 = vpack.c.bf16 %v604_v26, %v604_v26 }
 0x504   :  { %609 = vrot.lane.b32.xlu0 %v607_v27, %s1499_s2 }
 0x576   :  { %v610_v28 = vpop.permute.xlu0 %609 }
 0x577   :  { %1340 = vmatmul.mubr.msk.bf16.vlgmr.msra.gmra.mxu0 %vm36_vm1, %v610_v28 }
 0x578   :  { %1352 = vmatpush3.bf16.msra.mxu0 %v1601_v8  ;;  %1355 = vmatprep.mubr.msk.bf16.mxu0 %vm1494_vm0, %v1493_v2 }
 0x579   :  { %1353 = vmatprep.subr.bf16.mxu0 %v1493_v2 }
 0x57c   :  { %1354 = vmatpush3.bf16.msra.mxu0 %v1609_v9 }
 0x57d   :  { %1367 = vmatprep.subr.bf16.mxu0 %v1493_v2 }
 0x637   :  { %v648_v29 = vpop.f32.mrf.mxu0 }
 0x638   :  { %v661_v30 = vadd.f32 %v648_v29, %v1645_v33  ;;  %v654_v36 = vadd.f32 %v648_v29, %v606_v35 }
 0x639   :  { %v1341_v31 = vpop.f32.mrf.mxu0 }
 0x63a   :  { %663 = vrot.lane.b32.xlu1 %v661_v30, %s1497_s0  ;;  %v1232_v37 = vmul.f32 -1.442695, %v654_v36 }
 0x63b   :  { %v651_v32 = vpop.f32.mrf.mxu0 }
 0x63c   :  { %1433 = vpow2.f32 %v1232_v37 }
 0x63d   :  { %v1342_v34 = vpop.f32.mrf.mxu0 }
 0x649   :  { %v1434_v38 = vpop.eup %1433 }
 0x64a   :  { %v658_v39 = vadd.f32 1.0, %v1434_v38 }
 0x64c   :  { %1435 = vrcp.f32 %v658_v39 }
 0x659   :  { %v1436_v40 = vpop.eup %1435 }
 0x65a   :  { %v673_v46 = vsub.f32 1.0, %v1436_v40  ;;  %v679_v47 = vmul.f32 %v1436_v40, %v604_v26 }
 0x6ac   :  { %v664_v41 = vpop.permute.xlu1 %663 }
 0x6ad   :  { %v666_v42 = vmul.f32 %v1436_v40, %v664_v41 }
 0x6af   :  { %668 = vrot.lane.b32.xlu0 %v666_v42, %s1497_s0 }
 0x721   :  { %v669_v43 = vpop.permute.xlu0 %668 }
 0x722   :  { %v671_v44 = vadd.f32 %v669_v43, %v606_v35 }
 0x724   :  { %1437 = vtanh.f32 %v671_v44 }
 0x731   :  { %v1438_v45 = vpop.eup %1437 }
 0x732   :  { %675 = vrot.lane.b32.xlu1 %v1438_v45, %s1499_s2  ;;  %v834_v45 = vld [vmem:[#allocation2 + $0xa] sm:$0x3] }
 0x7a4   :  { %v676_v19 = vpop.permute.xlu1 %675 }
 0x7a5   :  { %v678_v48 = vmul.f32 %v676_v19, %v673_v46 }
 0x7a7   :  { %v680_v49 = vadd.f32 %v679_v47, %v678_v48 }
 0x7a9   :  { %v683_v50 = vpack.c.bf16 %v680_v49, %v680_v49 }
 0x7ab   :  { %685 = vrot.lane.b32.xlu0 %v683_v50, %s1499_s2 }
 0x81d   :  { %v686_v51 = vpop.permute.xlu0 %685 }
 0x81e   :  { %1348 = vmatmul.mubr.msk.bf16.vlgmr.msra.gmra.mxu1 %vm36_vm1, %v686_v51 }
 0x81f   :  { %1360 = vmatpush3.bf16.msra.mxu1 %v1601_v8  ;;  %1363 = vmatprep.mubr.msk.bf16.mxu1 %vm1494_vm0, %v1493_v2 }
 0x820   :  { %1361 = vmatprep.subr.bf16.mxu1 %v1493_v2 }
 0x823   :  { %1362 = vmatpush3.bf16.msra.mxu1 %v1609_v9 }
 0x824   :  { %1375 = vmatprep.subr.bf16.mxu1 %v1493_v2 }
 0x8de   :  { %v724_v53 = vpop.f32.mrf.mxu1 }
 0x8df   :  { %v737_v54 = vadd.f32 %v724_v53, %v1645_v33  ;;  %v730_v59 = vadd.f32 %v724_v53, %v682_v58 }
 0x8e0   :  { %v1349_v55 = vpop.f32.mrf.mxu1 }
 0x8e1   :  { %739 = vrot.lane.b32.xlu1 %v737_v54, %s1497_s0  ;;  %v1234_v60 = vmul.f32 -1.442695, %v730_v59 }
 0x8e2   :  { %v727_v56 = vpop.f32.mrf.mxu1 }
 0x8e3   :  { %1439 = vpow2.f32 %v1234_v60 }
 0x8e4   :  { %v1350_v57 = vpop.f32.mrf.mxu1 }
 0x8f0   :  { %v1440_v61 = vpop.eup %1439 }
 0x8f1   :  { %v734_v62 = vadd.f32 1.0, %v1440_v61 }
 0x8f3   :  { %1441 = vrcp.f32 %v734_v62 }
 0x900   :  { %v1442_v63 = vpop.eup %1441 }
 0x901   :  { %v749_v6 = vsub.f32 1.0, %v1442_v63  ;;  %v755_v10 = vmul.f32 %v1442_v63, %v680_v49 }
 0x953   :  { %v740_v0 = vpop.permute.xlu1 %739 }
 0x954   :  { %v742_v1 = vmul.f32 %v1442_v63, %v740_v0 }
 0x956   :  { %744 = vrot.lane.b32.xlu0 %v742_v1, %s1497_s0 }
 0x9c8   :  { %v745_v3 = vpop.permute.xlu0 %744 }
 0x9c9   :  { %v747_v4 = vadd.f32 %v745_v3, %v682_v58  ;;  %v910_v3 = vld [vmem:[#allocation2 + $0xc] sm:$0x3] }
 0x9cb   :  { %1443 = vtanh.f32 %v747_v4 }
 0x9d8   :  { %v1444_v5 = vpop.eup %1443 }
 0x9d9   :  { %751 = vrot.lane.b32.xlu1 %v1444_v5, %s1499_s2 }
 0xa4b   :  { %v752_v7 = vpop.permute.xlu1 %751 }
 0xa4c   :  { %v754_v11 = vmul.f32 %v752_v7, %v749_v6 }
 0xa4e   :  { %v756_v12 = vadd.f32 %v755_v10, %v754_v11 }
 0xa50   :  { %v759_v13 = vpack.c.bf16 %v756_v12, %v756_v12 }
 0xa52   :  { %761 = vrot.lane.b32.xlu0 %v759_v13, %s1499_s2 }
 0xac4   :  { %v762_v14 = vpop.permute.xlu0 %761 }
 0xac5   :  { %1356 = vmatmul.mubr.msk.bf16.vlgmr.msra.gmra.mxu0 %vm36_vm1, %v762_v14 }
 0xac6   :  { %1368 = vmatpush3.bf16.msra.mxu0 %v1601_v8  ;;  %1371 = vmatprep.mubr.msk.bf16.mxu0 %vm1494_vm0, %v1493_v2 }
 0xac7   :  { %1369 = vmatprep.subr.bf16.mxu0 %v1493_v2 }
 0xaca   :  { %1370 = vmatpush3.bf16.msra.mxu0 %v1609_v9 }
 0xacb   :  { %1383 = vmatprep.subr.bf16.mxu0 %v1493_v2 }
 0xb85   :  { %v800_v15 = vpop.f32.mrf.mxu0 }
 0xb86   :  { %v813_v16 = vadd.f32 %v800_v15, %v1645_v33  ;;  %v806_v22 = vadd.f32 %v800_v15, %v758_v21 }
 0xb87   :  { %v1357_v17 = vpop.f32.mrf.mxu0 }
 0xb88   :  { %815 = vrot.lane.b32.xlu1 %v813_v16, %s1497_s0  ;;  %v1236_v23 = vmul.f32 -1.442695, %v806_v22 }
 0xb89   :  { %v803_v18 = vpop.f32.mrf.mxu0 }
 0xb8a   :  { %1445 = vpow2.f32 %v1236_v23  ;;  %v1417_v23 = vld [vmem:[%s1769_s4 + $0x8] sm:$0xff]  }
 0xb8b   :  { %v1358_v20 = vpop.f32.mrf.mxu0 }
 0xb97   :  { %v1446_v24 = vpop.eup %1445 }
 0xb98   :  { %v810_v25 = vadd.f32 1.0, %v1446_v24  ;;  %v1211_v24 = vld [vmem:[%s1770_s5 + $0x1] ss:$0 sm:$0xff] }
 0xb9a   :  { %1447 = vrcp.f32 %v810_v25 }
 0xba7   :  { %v1448_v26 = vpop.eup %1447 }
 0xba8   :  { %v825_v32 = vsub.f32 1.0, %v1448_v26  ;;  %v831_v35 = vmul.f32 %v1448_v26, %v756_v12 }
 0xbfa   :  { %v816_v27 = vpop.permute.xlu1 %815 }
 0xbfb   :  { %v818_v28 = vmul.f32 %v1448_v26, %v816_v27  ;;  %v1418_v26 = vld [vmem:[%s1769_s4] sm:$0xff]   ;;  %v203_v27 = vadd.f32 %v1211_v24, %v1659_v52 }
 0xbfd   :  { %820 = vrot.lane.b32.xlu0 %v818_v28, %s1497_s0  ;;  %v1061_v28 = vpack.c.bf16 %v203_v27, %v203_v27 }
 0xc6f   :  { %v821_v29 = vpop.permute.xlu0 %820 }
 0xc70   :  { %v823_v30 = vadd.f32 %v821_v29, %v758_v21 }
 0xc72   :  { %1449 = vtanh.f32 %v823_v30 }
 0xc7f   :  { %v1450_v31 = vpop.eup %1449 }
 0xc80   :  { %827 = vrot.lane.b32.xlu1 %v1450_v31, %s1499_s2 }
 0xcf2   :  { %v828_v34 = vpop.permute.xlu1 %827 }
 0xcf3   :  { %v830_v36 = vmul.f32 %v828_v34, %v825_v32 }
 0xcf5   :  { %v832_v37 = vadd.f32 %v831_v35, %v830_v36 }
 0xcf7   :  { %v835_v38 = vpack.c.bf16 %v832_v37, %v832_v37 }
 0xcf9   :  { %837 = vrot.lane.b32.xlu0 %v835_v38, %s1499_s2 }
 0xd6b   :  { %v838_v39 = vpop.permute.xlu0 %837 }
 0xd6c   :  { %1364 = vmatmul.mubr.msk.bf16.vlgmr.msra.gmra.mxu1 %vm36_vm1, %v838_v39  ;;  %v986_v39 = vld [vmem:[#allocation2 + $0xe] sm:$0x3] }
 0xd6d   :  { %1376 = vmatpush3.bf16.msra.mxu1 %v1601_v8  ;;  %1379 = vmatprep.mubr.msk.bf16.mxu1 %vm1494_vm0, %v1493_v2 }
 0xd6e   :  { %1377 = vmatprep.subr.bf16.mxu1 %v1493_v2 }
 0xd71   :  { %1378 = vmatpush3.bf16.msra.mxu1 %v1609_v9 }
 0xd72   :  { %1391 = vmatprep.subr.bf16.mxu1 %v1493_v2 }
 0xe2c   :  { %v876_v40 = vpop.f32.mrf.mxu1 }
 0xe2d   :  { %v889_v41 = vadd.f32 %v876_v40, %v1645_v33  ;;  %v882_v46 = vadd.f32 %v876_v40, %v834_v45 }
 0xe2e   :  { %v1365_v42 = vpop.f32.mrf.mxu1 }
 0xe2f   :  { %891 = vrot.lane.b32.xlu1 %v889_v41, %s1497_s0  ;;  %v1238_v8 = vmul.f32 -1.442695, %v882_v46 }
 0xe30   :  { %v879_v43 = vpop.f32.mrf.mxu1 }
 0xe31   :  { %1451 = vpow2.f32 %v1238_v8  ;;  %v1419_v8 = vld [vmem:[%s1769_s4 + $0x18] sm:$0xff]  }
 0xe32   :  { %v1366_v44 = vpop.f32.mrf.mxu1 }
 0xe3e   :  { %v1452_v19 = vpop.eup %1451 }
 0xe3f   :  { %v886_v47 = vadd.f32 1.0, %v1452_v19  ;;  %v1420_v19 = vld [vmem:[%s1769_s4 + $0x10] sm:$0xff]   ;;  %s1500_s4 = smov [#allocation3]  }
 0xe40   :  { %s1198_s13 = sshll.u32 %s1500_s4, 4  ;;  %s1199_s13 = int_to_ptr.vmem [resolvable:$true] %s1198_s13 }
 0xe41   :  { %1453 = vrcp.f32 %v886_v47  ;;  %s1471_s14 = scalar_lea.vmem %s1199_s13, 32  ;;  %p1476_p1 = scmp.lt.s32.totalorder %s1199_s13, %s1199_s13 }
 0xe42   :  { %p1472_p0 = scmp.ne.s32.totalorder %s1199_s13, %s1471_s14  ;;  %p1477_p2 = scmp.lt.s32.totalorder %s1471_s14, %s1471_s14 }
 0xe44   :  { %p1478_p3 = por %p1477_p2, %p1476_p1 }
 0xe46   :  { %p1479_p4 = pnand %p1478_p3, %p1472_p0 }
 0xe4e   :  { %v1454_v48 = vpop.eup %1453 }
 0xe4f   :  { %v901_v54 = vsub.f32 1.0, %v1454_v48  ;;  %v907_v56 = vmul.f32 %v1454_v48, %v832_v37 }
 0xea1   :  { %v892_v49 = vpop.permute.xlu1 %891 }
 0xea2   :  { %v894_v9 = vmul.f32 %v1454_v48, %v892_v49 }
 0xea4   :  { %896 = vrot.lane.b32.xlu0 %v894_v9, %s1497_s0 }
 0xf16   :  { %v897_v50 = vpop.permute.xlu0 %896 }
 0xf17   :  { %v899_v51 = vadd.f32 %v897_v50, %v834_v45 }
 0xf19   :  { %1455 = vtanh.f32 %v899_v51 }
 0xf26   :  { %v1456_v53 = vpop.eup %1455 }
 0xf27   :  { %903 = vrot.lane.b32.xlu1 %v1456_v53, %s1499_s2 }
 0xf99   :  { %v904_v55 = vpop.permute.xlu1 %903 }
 0xf9a   :  { %v906_v57 = vmul.f32 %v904_v55, %v901_v54  ;;  %v1249_v55 = vld [vmem:[%s1770_s5 + $0x4] ss:$0 sm:$0xff] }
 0xf9c   :  { %v908_v58 = vadd.f32 %v907_v56, %v906_v57 }
 0xf9e   :  { %v911_v59 = vpack.c.bf16 %v908_v58, %v908_v58 }
 0xfa0   :  { %913 = vrot.lane.b32.xlu0 %v911_v59, %s1499_s2 }
0x1012   :  { %v914_v60 = vpop.permute.xlu0 %913 }
0x1013   :  { %1372 = vmatmul.mubr.msk.bf16.vlgmr.msra.gmra.mxu0 %vm36_vm1, %v914_v60 }
0x1014   :  { %1387 = vmatprep.mubr.msk.bf16.mxu0 %vm1494_vm0, %v1493_v2  ;;  %1384 = vmatpush3.bf16.msra.mxu0 %v1419_v8 }
0x1015   :  { %1385 = vmatprep.subr.bf16.mxu0 %v1493_v2 }
0x1018   :  { %1386 = vmatpush3.bf16.msra.mxu0 %v1420_v19 }
0x10d3   :  { %v952_v61 = vpop.f32.mrf.mxu0 }
0x10d4   :  { %v965_v62 = vadd.f32 %v952_v61, %v1645_v33  ;;  %v958_v4 = vadd.f32 %v952_v61, %v910_v3 }
0x10d5   :  { %v1373_v63 = vpop.f32.mrf.mxu0 }
0x10d6   :  { %967 = vrot.lane.b32.xlu1 %v965_v62, %s1497_s0  ;;  %v1240_v5 = vmul.f32 -1.442695, %v958_v4 }
0x10d7   :  { %v955_v0 = vpop.f32.mrf.mxu0 }
0x10d8   :  { %1457 = vpow2.f32 %v1240_v5 }
0x10d9   :  { %v1374_v1 = vpop.f32.mrf.mxu0 }
0x10e5   :  { %v1458_v6 = vpop.eup %1457 }
0x10e6   :  { %v962_v7 = vadd.f32 1.0, %v1458_v6 }
0x10e8   :  { %1459 = vrcp.f32 %v962_v7 }
0x10f5   :  { %v1460_v10 = vpop.eup %1459 }
0x10f6   :  { %v977_v16 = vsub.f32 1.0, %v1460_v10  ;;  %v983_v18 = vmul.f32 %v1460_v10, %v908_v58 }
0x1148   :  { %v968_v11 = vpop.permute.xlu1 %967 }
0x1149   :  { %v970_v12 = vmul.f32 %v1460_v10, %v968_v11 }
0x114b   :  { %972 = vrot.lane.b32.xlu0 %v970_v12, %s1497_s0 }
0x11bd   :  { %v973_v13 = vpop.permute.xlu0 %972 }
0x11be   :  { %v975_v14 = vadd.f32 %v973_v13, %v910_v3 }
0x11c0   :  { %1461 = vtanh.f32 %v975_v14 }
0x11cd   :  { %v1462_v15 = vpop.eup %1461 }
0x11ce   :  { %979 = vrot.lane.b32.xlu1 %v1462_v15, %s1499_s2 }
0x1240   :  { %v980_v17 = vpop.permute.xlu1 %979 }
0x1241   :  { %v982_v20 = vmul.f32 %v980_v17, %v977_v16 }
0x1243   :  { %v984_v21 = vadd.f32 %v983_v18, %v982_v20 }
0x1245   :  { %v987_v22 = vpack.c.bf16 %v984_v21, %v984_v21 }
0x1247   :  { %989 = vrot.lane.b32.xlu0 %v987_v22, %s1499_s2 }
0x12b9   :  { %v990_v25 = vpop.permute.xlu0 %989 }
0x12ba   :  { %1380 = vmatmul.mubr.msk.bf16.vlgmr.msra.gmra.mxu1 %vm36_vm1, %v990_v25 }
0x12bb   :  { %1392 = vmatpush3.bf16.msra.mxu1 %v1417_v23  ;;  %1395 = vmatprep.mubr.msk.bf16.mxu1 %vm1494_vm0, %v1493_v2 }
0x12bc   :  { %1393 = vmatprep.subr.bf16.mxu1 %v1493_v2 }
0x12bf   :  { %1394 = vmatpush3.bf16.msra.mxu1 %v1418_v26 }
0x12c2   :  { %1396 = vmatmul.mubr.msk.bf16.vlgmr.msra.gmra.mxu1 %vm36_vm1, %v1061_v28 }
0x137a   :  { %v1028_v29 = vpop.f32.mrf.mxu1 }
0x137b   :  { %v1041_v30 = vadd.f32 %v1028_v29, %v1645_v33  ;;  %v1034_v52 = vadd.f32 %v1028_v29, %v986_v39 }
0x137c   :  { %v1381_v31 = vpop.f32.mrf.mxu1 }
0x137d   :  { %1043 = vrot.lane.b32.xlu1 %v1041_v30, %s1497_s0  ;;  %v1242_v40 = vmul.f32 -1.442695, %v1034_v52 }
0x137e   :  { %v1031_v32 = vpop.f32.mrf.mxu1 }
0x137f   :  { %1463 = vpow2.f32 %v1242_v40 }
0x1380   :  { %v1382_v34 = vpop.f32.mrf.mxu1 }
0x1382   :  { %v1178_v35 = vpop.f32.mrf.mxu1 }
0x1384   :  { %v1397_v36 = vpop.f32.mrf.mxu1 }
0x1386   :  { %v1181_v37 = vpop.f32.mrf.mxu1 }
0x1388   :  { %v1398_v38 = vpop.f32.mrf.mxu1 }
0x138c   :  { %v1464_v41 = vpop.eup %1463 }
0x138d   :  { %v1038_v42 = vadd.f32 1.0, %v1464_v41 }
0x138f   :  { %1465 = vrcp.f32 %v1038_v42 }
0x139c   :  { %v1466_v43 = vpop.eup %1465 }
0x139d   :  { %v1053_v48 = vsub.f32 1.0, %v1466_v43  ;;  %v1059_v9 = vmul.f32 %v1466_v43, %v984_v21 }
0x13ef   :  { %v1044_v44 = vpop.permute.xlu1 %1043 }
0x13f0   :  { %v1046_v45 = vmul.f32 %v1466_v43, %v1044_v44 }
0x13f2   :  { %1048 = vrot.lane.b32.xlu0 %v1046_v45, %s1497_s0 }
0x1464   :  { %v1049_v33 = vpop.permute.xlu0 %1048 }
0x1465   :  { %v1051_v46 = vadd.f32 %v1049_v33, %v986_v39 }
0x1467   :  { %1467 = vtanh.f32 %v1051_v46 }
0x1474   :  { %v1468_v47 = vpop.eup %1467 }
0x1475   :  { %1055 = vrot.lane.b32.xlu1 %v1468_v47, %s1499_s2 }
0x14e7   :  { %v1056_v49 = vpop.permute.xlu1 %1055 }
0x14e8   :  { %v1058_v50 = vmul.f32 %v1056_v49, %v1053_v48 }
0x14ea   :  { %v1060_v51 = vadd.f32 %v1059_v9, %v1058_v50 }
0x14ec   :  { %v1066_v53 = vpack.c.bf16 %v1060_v51, %v1060_v51 }
0x14ee   :  { %1072 = vrot.lane.b32.xlu0 %v1066_v53, %s1499_s2 }
0x1560   :  { %v1073_v54 = vpop.permute.xlu0 %1072 }
0x1561   :  { %1388 = vmatmul.mubr.msk.bf16.vlgmr.msra.gmra.mxu0 %vm36_vm1, %v1073_v54 }
0x1621   :  { %v1123_v2 = vpop.f32.mrf.mxu0 }
0x1622   :  { %v1179_v56 = vadd.f32 %v1178_v35, %v1123_v2 }
0x1623   :  { %v1389_v57 = vpop.f32.mrf.mxu0 }
0x1624   :  { %v1188_v58 = vadd.f32 %v1249_v55, %v1179_v56 }
0x1625   :  { %v1126_v59 = vpop.f32.mrf.mxu0 }
0x1626   :  { %1469 = vtanh.f32 %v1188_v58 }
0x1627   :  { %v1390_v60 = vpop.f32.mrf.mxu0 }
0x1633   :  { %v1470_v61 = vpop.eup %1469 }
0x1634   :  { %1191 = vst.msk [vmem:[#allocation3] sm:$0x3] %vm1190_vm5, %v1470_v61 }
0x1635   :  { %1482 = shalt.err (!%p1479_p4)
}
0x1636   :  { %1201 = dma.vmem_to_hbm [thread:$0]  %s1199_s13, 32, %s1771_s6, [#allocation4]  }
0x1637   :  { %1491 = dma.done.wait [#allocation4], 32  }
0x1638   :  { %1492 = vsyncadd [#allocation4], 4294967264 }
0x1639   :  { %1205 = vsyncpa [#allocation4], 1 }

</bundles_post_ra>
